<compile_context>
chip_gen: v5e
topology: v5e:2x2
jax: 0.10.0
libtpu: 0.0.40
codegen_flags: <defaults>
</compile_context>

<pallas_src>
import jax
import jax.numpy as jnp
from jax.experimental import pallas as pl
from jax.experimental.pallas import tpu as pltpu

_LANES = 128  # TPU vreg lane width


def _round_up(x, m):
    return ((x + m - 1) // m) * m


def _policy_kernel(x_ref, w1_ref, b1_ref, w2_ref, b2_ref, w3_ref, b3_ref,
                   pa_ref, logpa_ref):
    # ---- hidden layer 1: relu(x @ W1 + b1)  (bf16 operands, f32 accumulate)
    h1 = jnp.dot(x_ref[...], w1_ref[...], preferred_element_type=jnp.float32)
    h1 = jnp.maximum(h1 + b1_ref[...], 0.0)                     # f32

    # ---- hidden layer 2: relu(h1 @ W2 + b2)
    h2 = jnp.dot(h1.astype(jnp.bfloat16), w2_ref[...],
                 preferred_element_type=jnp.float32)
    h2 = jnp.maximum(h2 + b2_ref[...], 0.0)                     # f32

    # ---- logits layer: h2 @ W3 + b3  (W3/b3 are lane-padded to 128 cols;
    #      padded lanes carry a -1e30 bias so they vanish in the softmax)
    logits = jnp.dot(h2.astype(jnp.bfloat16), w3_ref[...],
                     preferred_element_type=jnp.float32)
    logits = logits + b3_ref[...]                               # (TB, 128) f32

    # ---- softmax / log-softmax over the action axis (dim=1) ----
    m = jnp.max(logits, axis=-1, keepdims=True)
    shifted = logits - m
    e = jnp.exp(shifted)
    denom = jnp.sum(e, axis=-1, keepdims=True)
    pa_ref[...] = e * pl.reciprocal(denom, approx=True)         # EUP recip
    logpa_ref[...] = shifted - jnp.log(denom)


def softmax_policy_forward(s, params, *, block_rows=256):
    """s: (B, s_dim) float32.  params: (w1,b1,w2,b2,w3,b3) with w_i as
    (in, out) f32.  Returns (PA_s, log_PA_s), each (B, n_actions) f32."""
    w1, b1, w2, b2, w3, b3 = params
    B, s_dim = s.shape
    hidden = w1.shape[1]
    n_actions = w3.shape[1]
    n_pad = _round_up(n_actions, _LANES)

    # bf16 MXU operands; biases stay f32.
    w1b = w1.astype(jnp.bfloat16)
    w2b = w2.astype(jnp.bfloat16)
    b1f = b1.astype(jnp.float32).reshape(1, hidden)
    b2f = b2.astype(jnp.float32).reshape(1, hidden)

    # Lane-dense logits: pad W3 with zero columns, pad b3 with -1e30 so the
    # padded lanes contribute nothing to max/sum of the softmax.
    w3p = jnp.zeros((hidden, n_pad), jnp.bfloat16)
    w3p = w3p.at[:, :n_actions].set(w3.astype(jnp.bfloat16))
    b3p = jnp.full((1, n_pad), -1e30, jnp.float32)
    b3p = b3p.at[:, :n_actions].set(b3.astype(jnp.float32).reshape(1, n_actions))

    # Row tile: 256 saturates the v6e/v7x MXU M dim (use 128 on v5e); for
    # small batches just round B up to a multiple of 8 (one grid step).
    tb = min(block_rows, _round_up(B, 8))
    b_pad = _round_up(B, tb)
    x = s.astype(jnp.bfloat16)
    if b_pad != B:
        x = jnp.pad(x, ((0, b_pad - B), (0, 0)))

    grid = (b_pad // tb,)

    const = lambda shape: pl.BlockSpec(shape, lambda i: (0,) * len(shape))

    out_shapes = (
        jax.ShapeDtypeStruct((b_pad, n_pad), jnp.float32),
        jax.ShapeDtypeStruct((b_pad, n_pad), jnp.float32),
    )

    pa_p, logpa_p = pl.pallas_call(
        _policy_kernel,
        out_shape=out_shapes,
        grid_spec=pltpu.PrefetchScalarGridSpec(
            num_scalar_prefetch=0,
            grid=grid,
            in_specs=[
                pl.BlockSpec((tb, s_dim), lambda i: (i, 0)),   # x rows tiled
                const((s_dim, hidden)),                        # W1 resident
                const((1, hidden)),                            # b1
                const((hidden, hidden)),                       # W2 resident
                const((1, hidden)),                            # b2
                const((hidden, n_pad)),                        # W3 (padded)
                const((1, n_pad)),                             # b3 (padded)
            ],
            out_specs=[
                pl.BlockSpec((tb, n_pad), lambda i: (i, 0)),
                pl.BlockSpec((tb, n_pad), lambda i: (i, 0)),
            ],
        ),
        compiler_params=pltpu.CompilerParams(
            dimension_semantics=("parallel",),
        ),
    )(x, w1b, b1f, w2b, b2f, w3p, b3p)

    # Strip batch/lane padding.
    return pa_p[:B, :n_actions], logpa_p[:B, :n_actions]


def init_params(key, s_dim, n_actions, hidden=256):
    """Deterministic synthetic parameter init (matches module shapes)."""
    k1, k2, k3 = jax.random.split(key, 3)
    w1 = jax.random.normal(k1, (s_dim, hidden), jnp.float32) * (1.0 / jnp.sqrt(s_dim))
    b1 = jnp.zeros((1, hidden), jnp.float32)
    w2 = jax.random.normal(k2, (hidden, hidden), jnp.float32) * (1.0 / jnp.sqrt(hidden))
    b2 = jnp.zeros((1, hidden), jnp.float32)
    # logits layer: small-gain init (gain 0.01), zero bias
    w3 = jax.random.normal(k3, (hidden, n_actions), jnp.float32) * 0.01
    b3 = jnp.zeros((1, n_actions), jnp.float32)
    return (w1, b1, w2, b2, w3, b3)


if __name__ == "__main__":
    key = jax.random.PRNGKey(0)
    k_in, k_p = jax.random.split(key)

    # NOTE: at B=8 this workload is launch/DMA-latency bound; batch more
    # states per call in a real RL loop to amortize weight movement.
    B, s_dim, n_actions = 8, 32, 8
    s = jax.random.normal(k_in, (B, s_dim), jnp.float32)
    params = init_params(k_p, s_dim, n_actions)

    fwd = jax.jit(softmax_policy_forward)
    pa, log_pa = fwd(s, params)
    jax.block_until_ready((pa, log_pa))

    # ---- sanity checks against plain-JAX f32 reference (bf16 tolerance) ----
    w1, b1, w2, b2, w3, b3 = params
    h1 = jnp.maximum(s @ w1 + b1, 0.0)
    h2 = jnp.maximum(h1 @ w2 + b2, 0.0)
    logits = h2 @ w3 + b3
    pa_ref = jax.nn.softmax(logits, axis=1)
    logpa_ref = jax.nn.log_softmax(logits, axis=1)

    assert pa.shape == (B, n_actions) and log_pa.shape == (B, n_actions)
    assert jnp.allclose(pa, pa_ref, atol=2e-2), float(jnp.max(jnp.abs(pa - pa_ref)))
    assert jnp.allclose(log_pa, logpa_ref, atol=2e-2), float(jnp.max(jnp.abs(log_pa - logpa_ref)))
    # distribution sanity: rows sum to ~1, exp(log_pa) ~ pa
    assert jnp.allclose(jnp.sum(pa, axis=1), 1.0, atol=5e-3)
    assert jnp.allclose(jnp.exp(log_pa), pa, atol=1e-2)

    print("KERNEL_OK")
</pallas_src>

<mosaic_0001>
module attributes {stable_mosaic.version = 11 : i64} {
  func.func @_policy_kernel(%arg0: i32, %arg1: memref<8x32xbf16, #tpu.memory_space<vmem>>, %arg2: memref<32x256xbf16, #tpu.memory_space<vmem>>, %arg3: memref<1x256xf32, #tpu.memory_space<vmem>>, %arg4: memref<256x256xbf16, #tpu.memory_space<vmem>>, %arg5: memref<1x256xf32, #tpu.memory_space<vmem>>, %arg6: memref<256x128xbf16, #tpu.memory_space<vmem>>, %arg7: memref<1x128xf32, #tpu.memory_space<vmem>>, %arg8: memref<8x128xf32, #tpu.memory_space<vmem>>, %arg9: memref<8x128xf32, #tpu.memory_space<vmem>>) attributes {dimension_semantics = [#tpu.dimension_semantics<parallel>], iteration_bounds = array<i64: 1>, scalar_prefetch = 0 : i64, scratch_operands = 0 : i64, tpu.core_type = #tpu.core_type<tc>, window_params = [{transform_indices = @transform_0, window_bounds = array<i64: 8, 32>}, {pipeline_mode = #tpu.pipeline_mode<synchronous>, transform_indices = @transform_1, window_bounds = array<i64: 32, 256>}, {pipeline_mode = #tpu.pipeline_mode<synchronous>, transform_indices = @transform_2, window_bounds = array<i64: 1, 256>}, {pipeline_mode = #tpu.pipeline_mode<synchronous>, transform_indices = @transform_3, window_bounds = array<i64: 256, 256>}, {pipeline_mode = #tpu.pipeline_mode<synchronous>, transform_indices = @transform_4, window_bounds = array<i64: 1, 256>}, {pipeline_mode = #tpu.pipeline_mode<synchronous>, transform_indices = @transform_5, window_bounds = array<i64: 256, 128>}, {pipeline_mode = #tpu.pipeline_mode<synchronous>, transform_indices = @transform_6, window_bounds = array<i64: 1, 128>}, {transform_indices = @transform_7, window_bounds = array<i64: 8, 128>}, {transform_indices = @transform_8, window_bounds = array<i64: 8, 128>}]} {
    %c0 = arith.constant 0 : index
    %c0_0 = arith.constant 0 : index
    %0 = vector.load %arg1[%c0, %c0_0] : memref<8x32xbf16, #tpu.memory_space<vmem>>, vector<8x32xbf16>
    %c0_1 = arith.constant 0 : index
    %c0_2 = arith.constant 0 : index
    %1 = vector.load %arg2[%c0_1, %c0_2] : memref<32x256xbf16, #tpu.memory_space<vmem>>, vector<32x256xbf16>
    %cst = arith.constant dense<0.000000e+00> : vector<8x256xf32>
    %2 = tpu.matmul %0, %1, %cst {dimension_numbers = #tpu.dot_dimension_numbers<[1], [0], [0], [1], [0, 0, 1, 1], [], []>} : vector<8x32xbf16>, vector<32x256xbf16>, vector<8x256xf32> -> vector<8x256xf32>
    %c0_3 = arith.constant 0 : index
    %c0_4 = arith.constant 0 : index
    %3 = vector.load %arg3[%c0_3, %c0_4] : memref<1x256xf32, #tpu.memory_space<vmem>>, vector<1x256xf32>
    %4 = vector.broadcast %3 : vector<1x256xf32> to vector<8x256xf32>
    %5 = arith.addf %2, %4 : vector<8x256xf32>
    %cst_5 = arith.constant 0.000000e+00 : f32
    %6 = vector.broadcast %cst_5 : f32 to vector<8x256xf32>
    %7 = arith.maximumf %5, %6 : vector<8x256xf32>
    %8 = arith.truncf %7 : vector<8x256xf32> to vector<8x256xbf16>
    %c0_6 = arith.constant 0 : index
    %c0_7 = arith.constant 0 : index
    %9 = vector.load %arg4[%c0_6, %c0_7] : memref<256x256xbf16, #tpu.memory_space<vmem>>, vector<256x256xbf16>
    %cst_8 = arith.constant dense<0.000000e+00> : vector<8x256xf32>
    %10 = tpu.matmul %8, %9, %cst_8 {dimension_numbers = #tpu.dot_dimension_numbers<[1], [0], [0], [1], [0, 0, 1, 1], [], []>} : vector<8x256xbf16>, vector<256x256xbf16>, vector<8x256xf32> -> vector<8x256xf32>
    %c0_9 = arith.constant 0 : index
    %c0_10 = arith.constant 0 : index
    %11 = vector.load %arg5[%c0_9, %c0_10] : memref<1x256xf32, #tpu.memory_space<vmem>>, vector<1x256xf32>
    %12 = vector.broadcast %11 : vector<1x256xf32> to vector<8x256xf32>
    %13 = arith.addf %10, %12 : vector<8x256xf32>
    %cst_11 = arith.constant 0.000000e+00 : f32
    %14 = vector.broadcast %cst_11 : f32 to vector<8x256xf32>
    %15 = arith.maximumf %13, %14 : vector<8x256xf32>
    %16 = arith.truncf %15 : vector<8x256xf32> to vector<8x256xbf16>
    %c0_12 = arith.constant 0 : index
    %c0_13 = arith.constant 0 : index
    %17 = vector.load %arg6[%c0_12, %c0_13] : memref<256x128xbf16, #tpu.memory_space<vmem>>, vector<256x128xbf16>
    %cst_14 = arith.constant dense<0.000000e+00> : vector<8x128xf32>
    %18 = tpu.matmul %16, %17, %cst_14 {dimension_numbers = #tpu.dot_dimension_numbers<[1], [0], [0], [1], [0, 0, 1, 1], [], []>} : vector<8x256xbf16>, vector<256x128xbf16>, vector<8x128xf32> -> vector<8x128xf32>
    %c0_15 = arith.constant 0 : index
    %c0_16 = arith.constant 0 : index
    %19 = vector.load %arg7[%c0_15, %c0_16] : memref<1x128xf32, #tpu.memory_space<vmem>>, vector<1x128xf32>
    %20 = vector.broadcast %19 : vector<1x128xf32> to vector<8x128xf32>
    %21 = arith.addf %18, %20 : vector<8x128xf32>
    %cst_17 = arith.constant dense<0xFF800000> : vector<8xf32>
    %22 = vector.multi_reduction <maximumf>, %21, %cst_17 [1] : vector<8x128xf32> to vector<8xf32>
    %23 = vector.shape_cast %22 : vector<8xf32> to vector<8x1xf32>
    %24 = vector.broadcast %23 : vector<8x1xf32> to vector<8x128xf32>
    %25 = arith.subf %21, %24 : vector<8x128xf32>
    %26 = math.exp %25 : vector<8x128xf32>
    %cst_18 = arith.constant dense<0.000000e+00> : vector<8xf32>
    %27 = vector.multi_reduction <add>, %26, %cst_18 [1] : vector<8x128xf32> to vector<8xf32>
    %28 = vector.shape_cast %27 : vector<8xf32> to vector<8x1xf32>
    %29 = tpu.reciprocal %28 {approx = true} : vector<8x1xf32> -> vector<8x1xf32>
    %30 = vector.broadcast %29 : vector<8x1xf32> to vector<8x128xf32>
    %31 = arith.mulf %26, %30 : vector<8x128xf32>
    %c0_19 = arith.constant 0 : index
    %c0_20 = arith.constant 0 : index
    %32 = vector.load %arg8[%c0_19, %c0_20] : memref<8x128xf32, #tpu.memory_space<vmem>>, vector<8x128xf32>
    tpu.vector_store %arg8[%c0_19, %c0_20], %31 {strides = array<i32>} : memref<8x128xf32, #tpu.memory_space<vmem>>, vector<8x128xf32>,
    %33 = math.log %28 : vector<8x1xf32>
    %34 = vector.broadcast %33 : vector<8x1xf32> to vector<8x128xf32>
    %35 = arith.subf %25, %34 : vector<8x128xf32>
    %c0_21 = arith.constant 0 : index
    %c0_22 = arith.constant 0 : index
    %36 = vector.load %arg9[%c0_21, %c0_22] : memref<8x128xf32, #tpu.memory_space<vmem>>, vector<8x128xf32>
    tpu.vector_store %arg9[%c0_21, %c0_22], %35 {strides = array<i32>} : memref<8x128xf32, #tpu.memory_space<vmem>>, vector<8x128xf32>,
    return
  }
  func.func @transform_0(%arg0: i32) -> (i32, i32) {
    %c0_i32 = arith.constant 0 : i32
    %c0_i32_0 = arith.constant 0 : i32
    return %arg0, %c0_i32 : i32, i32
  }
  func.func @transform_1(%arg0: i32) -> (i32, i32) {
    %c0_i32 = arith.constant 0 : i32
    %c0_i32_0 = arith.constant 0 : i32
    %c0_i32_1 = arith.constant 0 : i32
    return %c0_i32, %c0_i32_0 : i32, i32
  }
  func.func @transform_2(%arg0: i32) -> (i32, i32) {
    %c0_i32 = arith.constant 0 : i32
    %c0_i32_0 = arith.constant 0 : i32
    %c0_i32_1 = arith.constant 0 : i32
    return %c0_i32, %c0_i32_0 : i32, i32
  }
  func.func @transform_3(%arg0: i32) -> (i32, i32) {
    %c0_i32 = arith.constant 0 : i32
    %c0_i32_0 = arith.constant 0 : i32
    %c0_i32_1 = arith.constant 0 : i32
    return %c0_i32, %c0_i32_0 : i32, i32
  }
  func.func @transform_4(%arg0: i32) -> (i32, i32) {
    %c0_i32 = arith.constant 0 : i32
    %c0_i32_0 = arith.constant 0 : i32
    %c0_i32_1 = arith.constant 0 : i32
    return %c0_i32, %c0_i32_0 : i32, i32
  }
  func.func @transform_5(%arg0: i32) -> (i32, i32) {
    %c0_i32 = arith.constant 0 : i32
    %c0_i32_0 = arith.constant 0 : i32
    %c0_i32_1 = arith.constant 0 : i32
    return %c0_i32, %c0_i32_0 : i32, i32
  }
  func.func @transform_6(%arg0: i32) -> (i32, i32) {
    %c0_i32 = arith.constant 0 : i32
    %c0_i32_0 = arith.constant 0 : i32
    %c0_i32_1 = arith.constant 0 : i32
    return %c0_i32, %c0_i32_0 : i32, i32
  }
  func.func @transform_7(%arg0: i32) -> (i32, i32) {
    %c0_i32 = arith.constant 0 : i32
    %c0_i32_0 = arith.constant 0 : i32
    return %arg0, %c0_i32 : i32, i32
  }
  func.func @transform_8(%arg0: i32) -> (i32, i32) {
    %c0_i32 = arith.constant 0 : i32
    %c0_i32_0 = arith.constant 0 : i32
    return %arg0, %c0_i32 : i32, i32
  }
}

</mosaic_0001>

<bundles_post_ra>
// kernel: softmax_policy_forward.1
= control target key start
LH: loop header
LB: loop body
LE: loop exit
PB: predicated region body
PF: predicated region fallthrough
CT: control target
= control target key end

     0   :  { %14 = vsyncpa [#allocation3], 0  ;;  %vm62_vm0 = vcmask 261120   ;;  %s1208_s0 = inlined_call_operand.vmem [shape: bf16[8,32], index: 0, kind: input, shape index: {}]   ;;  %s1209_s1 = inlined_call_operand.vmem [shape: bf16[32,256], index: 1, kind: input, shape index: {}]   ;;  %s1210_s2 = inlined_call_operand.vmem [shape: f32[1,256], index: 2, kind: input, shape index: {}]   ;;  %s1211_s3 = inlined_call_operand.vmem [shape: bf16[256,256], index: 3, kind: input, shape index: {}]   ;;  %s1212_s4 = inlined_call_operand.vmem [shape: f32[1,256], index: 4, kind: input, shape index: {}]   ;;  %s1213_s5 = inlined_call_operand.vmem [shape: bf16[256,128], index: 5, kind: input, shape index: {}]   ;;  %s1214_s6 = inlined_call_operand.vmem [shape: f32[1,128], index: 6, kind: input, shape index: {}]   ;;  %s1215_s7 = inlined_call_operand.hbm [shape: f32[8,128], index: 7, kind: output, shape index: {0}]   ;;  %s1216_s8 = inlined_call_operand.hbm [shape: f32[8,128], index: 8, kind: output, shape index: {1}]  }
   0x1   :  { %v564_v0 = vld [vmem:[%s1209_s1 + $0x10] sm:$0xf]  ;;  %v767_v1 = vld [vmem:[%s1209_s1 + $0x14] sm:$0xf0]  ;;  %v766_v2 = vld [vmem:[%s1209_s1 + $0x14] sm:$0xf] }
   0x2   :  { %v565_v3 = vor.u32 %v767_v1, %v564_v0  ;;  %v566_v4 = vld [vmem:[%s1209_s1 + $0x18] sm:$0xf0]  ;;  %v556_v5 = vld [vmem:[%s1209_s1] sm:$0xf]  ;;  %v765_v6 = vld [vmem:[%s1209_s1 + $0x4] sm:$0xf0] }
   0x3   :  { %v569_v7 = vor.u32 %v766_v2, %v566_v4  ;;  %v764_v8 = vld [vmem:[%s1209_s1 + $0x4] sm:$0xf]  ;;  %v558_v9 = vld [vmem:[%s1209_s1 + $0x8] sm:$0xf0]  ;;  %v557_v10 = vor.u32 %v765_v6, %v556_v5  ;;  %v630_v11 = vld [vmem:[%s1211_s3 + $0x70] sm:$0xf] }
   0x4   :  { %72 = vmatpush.bf16.msra.mxu0 %v565_v3  ;;  %v783_v12 = vld [vmem:[%s1211_s3 + $0x74] sm:$0xf0]  ;;  %v561_v13 = vor.u32 %v764_v8, %v558_v9  ;;  %v694_v15 = vld [vmem:[%s1211_s3 + $0xf0] sm:$0xf]  ;;  %v782_v17 = vld [vmem:[%s1211_s3 + $0x74] sm:$0xf] }
   0x5   :  { %85 = vmatpush.bf16.msra.mxu1 %v569_v7  ;;  %v631_v14 = vor.u32 %v783_v12, %v630_v11  ;;  %v799_v16 = vld [vmem:[%s1211_s3 + $0xf4] sm:$0xf0]  ;;  %v31_v18 = vld [vmem:[%s1208_s0] sm:$0xf]  ;;  %v632_v20 = vld [vmem:[%s1211_s3 + $0x78] sm:$0xf0] }
   0x6   :  { %v695_v19 = vor.u32 %v799_v16, %v694_v15  ;;  %v798_v21 = vld [vmem:[%s1211_s3 + $0xf4] sm:$0xf]  ;;  %v696_v22 = vld [vmem:[%s1211_s3 + $0xf8] sm:$0xf0]  ;;  %v635_v23 = vor.u32 %v782_v17, %v632_v20  ;;  %v622_v25 = vld [vmem:[%s1211_s3 + $0x60] sm:$0xf] }
   0x7   :  { %294 = vmatpush.bf16.msra.mxu2 %v631_v14  ;;  %v699_v24 = vor.u32 %v798_v21, %v696_v22  ;;  %v781_v26 = vld [vmem:[%s1211_s3 + $0x64] sm:$0xf0]  ;;  %v686_v27 = vld [vmem:[%s1211_s3 + $0xe0] sm:$0xf]  ;;  %v780_v30 = vld [vmem:[%s1211_s3 + $0x64] sm:$0xf] }
   0x8   :  { %73 = vmatpush.bf16.msra.mxu0 %v557_v10  ;;  %307 = vmatpush.bf16.msra.mxu3 %v695_v19  ;;  %v623_v28 = vor.u32 %v781_v26, %v622_v25  ;;  %v797_v29 = vld [vmem:[%s1211_s3 + $0xe4] sm:$0xf0]  ;;  %v624_v31 = vld [vmem:[%s1211_s3 + $0x68] sm:$0xf0]  ;;  %v796_v34 = vld [vmem:[%s1211_s3 + $0xe4] sm:$0xf] }
   0x9   :  { %86 = vmatpush.bf16.msra.mxu1 %v561_v13  ;;  %v687_v32 = vor.u32 %v797_v29, %v686_v27  ;;  %v627_v33 = vor.u32 %v780_v30, %v624_v31  ;;  %v688_v35 = vld [vmem:[%s1211_s3 + $0xe8] sm:$0xf0]  ;;  %v614_v36 = vld [vmem:[%s1211_s3 + $0x50] sm:$0xf]  ;;  %v779_v38 = vld [vmem:[%s1211_s3 + $0x54] sm:$0xf0] }
   0xa   :  { %v691_v37 = vor.u32 %v796_v34, %v688_v35  ;;  %v678_v39 = vld [vmem:[%s1211_s3 + $0xd0] sm:$0xf]  ;;  %v795_v40 = vld [vmem:[%s1211_s3 + $0xd4] sm:$0xf0]  ;;  %v615_v41 = vor.u32 %v779_v38, %v614_v36  ;;  %v778_v42 = vld [vmem:[%s1211_s3 + $0x54] sm:$0xf] }
   0xb   :  { %570 = vmatmul.msk.bf16.vlgmr.msra.gmra.mxu0 %vm62_vm0, %v31_v18  ;;  %295 = vmatpush.bf16.msra.mxu2 %v623_v28  ;;  %v616_v43 = vld [vmem:[%s1211_s3 + $0x58] sm:$0xf0]  ;;  %v794_v44 = vld [vmem:[%s1211_s3 + $0xd4] sm:$0xf]  ;;  %v679_v45 = vor.u32 %v795_v40, %v678_v39  ;;  %v606_v47 = vld [vmem:[%s1211_s3 + $0x40] sm:$0xf] }
   0xc   :  { %320 = vmatpush.bf16.msrb.mxu0 %v635_v23  ;;  %571 = vmatmul.msk.bf16.vlgmr.msra.gmra.mxu1 %vm62_vm0, %v31_v18  ;;  %v680_v46 = vld [vmem:[%s1211_s3 + $0xd8] sm:$0xf0]  ;;  %v777_v48 = vld [vmem:[%s1211_s3 + $0x44] sm:$0xf0]  ;;  %v619_v49 = vor.u32 %v778_v42, %v616_v43  ;;  %v670_v50 = vld [vmem:[%s1211_s3 + $0xc0] sm:$0xf] }
   0xd   :  { %333 = vmatpush.bf16.msrb.mxu1 %v699_v24  ;;  %308 = vmatpush.bf16.msra.mxu3 %v687_v32  ;;  %v793_v51 = vld [vmem:[%s1211_s3 + $0xc4] sm:$0xf0]  ;;  %v683_v52 = vor.u32 %v794_v44, %v680_v46  ;;  %v776_v53 = vld [vmem:[%s1211_s3 + $0x44] sm:$0xf]  ;;  %v608_v54 = vld [vmem:[%s1211_s3 + $0x48] sm:$0xf0]  ;;  %v607_v55 = vor.u32 %v777_v48, %v606_v47 }
   0xe   :  { %v792_v56 = vld [vmem:[%s1211_s3 + $0xc4] sm:$0xf]  ;;  %v672_v57 = vld [vmem:[%s1211_s3 + $0xc8] sm:$0xf0]  ;;  %v671_v58 = vor.u32 %v793_v51, %v670_v50  ;;  %v598_v59 = vld [vmem:[%s1211_s3 + $0x30] sm:$0xf]  ;;  %v611_v61 = vor.u32 %v776_v53, %v608_v54 }
   0xf   :  { %296 = vmatpush.bf16.msra.mxu2 %v615_v41  ;;  %v775_v60 = vld [vmem:[%s1211_s3 + $0x34] sm:$0xf0]  ;;  %v662_v62 = vld [vmem:[%s1211_s3 + $0xb0] sm:$0xf]  ;;  %v675_v0 = vor.u32 %v792_v56, %v672_v57  ;;  %v774_v1 = vld [vmem:[%s1211_s3 + $0x34] sm:$0xf] }
  0x10   :  { %321 = vmatpush.bf16.msrb.mxu0 %v627_v33  ;;  %v791_v63 = vld [vmem:[%s1211_s3 + $0xb4] sm:$0xf0]  ;;  %v600_v2 = vld [vmem:[%s1211_s3 + $0x38] sm:$0xf0]  ;;  %v599_v3 = vor.u32 %v775_v60, %v598_v59  ;;  %v790_v4 = vld [vmem:[%s1211_s3 + $0xb4] sm:$0xf] }
  0x11   :  { %334 = vmatpush.bf16.msrb.mxu1 %v691_v37  ;;  %309 = vmatpush.bf16.msra.mxu3 %v679_v45  ;;  %v664_v5 = vld [vmem:[%s1211_s3 + $0xb8] sm:$0xf0]  ;;  %v663_v6 = vor.u32 %v791_v63, %v662_v62  ;;  %v590_v7 = vld [vmem:[%s1211_s3 + $0x20] sm:$0xf]  ;;  %v773_v8 = vld [vmem:[%s1211_s3 + $0x24] sm:$0xf0]  ;;  %v603_v9 = vor.u32 %v774_v1, %v600_v2 }
  0x12   :  { %v654_v10 = vld [vmem:[%s1211_s3 + $0xa0] sm:$0xf]  ;;  %v789_v11 = vld [vmem:[%s1211_s3 + $0xa4] sm:$0xf0] }
  0x13   :  { %297 = vmatpush.bf16.msra.mxu2 %v607_v55 }
  0x14   :  { %322 = vmatpush.bf16.msrb.mxu0 %v619_v49 }
  0x15   :  { %335 = vmatpush.bf16.msrb.mxu1 %v683_v52  ;;  %310 = vmatpush.bf16.msra.mxu3 %v671_v58 }
  0x18   :  { %323 = vmatpush.bf16.msrb.mxu0 %v611_v61 }
  0x19   :  { %15 = vsyncpa [#allocation5], 0  ;;  %336 = vmatpush.bf16.msrb.mxu1 %v675_v0  ;;  %v667_v12 = vor.u32 %v790_v4, %v664_v5  ;;  %v772_v13 = vld [vmem:[%s1211_s3 + $0x24] sm:$0xf]  ;;  %v592_v14 = vld [vmem:[%s1211_s3 + $0x28] sm:$0xf0]  ;;  %298 = vmatpush.bf16.msra.mxu2 %v599_v3  ;;  %v591_v15 = vor.u32 %v773_v8, %v590_v7  ;;  %v655_v18 = vor.u32 %v789_v11, %v654_v10 }
  0x1a   :  { %v788_v16 = vld [vmem:[%s1211_s3 + $0xa4] sm:$0xf]  ;;  %v656_v17 = vld [vmem:[%s1211_s3 + $0xa8] sm:$0xf0]  ;;  %311 = vmatpush.bf16.msra.mxu3 %v663_v6  ;;  %v595_v19 = vor.u32 %v772_v13, %v592_v14  ;;  %v582_v21 = vld [vmem:[%s1211_s3 + $0x10] sm:$0xf] }
  0x1b   :  { %v659_v20 = vor.u32 %v788_v16, %v656_v17  ;;  %v771_v22 = vld [vmem:[%s1211_s3 + $0x14] sm:$0xf0]  ;;  %v646_v23 = vld [vmem:[%s1211_s3 + $0x90] sm:$0xf]  ;;  %v770_v26 = vld [vmem:[%s1211_s3 + $0x14] sm:$0xf] }
  0x1c   :  { %324 = vmatpush.bf16.msrb.mxu0 %v603_v9  ;;  %v583_v24 = vor.u32 %v771_v22, %v582_v21  ;;  %v787_v25 = vld [vmem:[%s1211_s3 + $0x94] sm:$0xf0]  ;;  %v584_v27 = vld [vmem:[%s1211_s3 + $0x18] sm:$0xf0]  ;;  %v786_v30 = vld [vmem:[%s1211_s3 + $0x94] sm:$0xf] }
  0x1d   :  { %337 = vmatpush.bf16.msrb.mxu1 %v667_v12  ;;  %299 = vmatpush.bf16.msra.mxu2 %v591_v15  ;;  %v647_v28 = vor.u32 %v787_v25, %v646_v23  ;;  %v587_v29 = vor.u32 %v770_v26, %v584_v27  ;;  %v648_v31 = vld [vmem:[%s1211_s3 + $0x98] sm:$0xf0]  ;;  %v574_v33 = vld [vmem:[%s1211_s3] sm:$0xf]  ;;  %v769_v34 = vld [vmem:[%s1211_s3 + $0x4] sm:$0xf0] }
  0x1e   :  { %312 = vmatpush.bf16.msra.mxu3 %v655_v18  ;;  %v651_v32 = vor.u32 %v786_v30, %v648_v31  ;;  %v638_v35 = vld [vmem:[%s1211_s3 + $0x80] sm:$0xf]  ;;  %v575_v36 = vor.u32 %v769_v34, %v574_v33  ;;  %v785_v37 = vld [vmem:[%s1211_s3 + $0x84] sm:$0xf0]  ;;  %v768_v38 = vld [vmem:[%s1211_s3 + $0x4] sm:$0xf] }
  0x1f   :  { %v576_v39 = vld [vmem:[%s1211_s3 + $0x8] sm:$0xf0]  ;;  %v639_v40 = vor.u32 %v785_v37, %v638_v35  ;;  %v784_v42 = vld [vmem:[%s1211_s3 + $0x84] sm:$0xf]  ;;  %v815_v45 = vld [vmem:[%s1213_s5 + $0x78] sm:$0xff]  ;;  %s877_s17 = smov [#allocation2]  }
  0x20   :  { %325 = vmatpush.bf16.msrb.mxu0 %v595_v19  ;;  %v579_v41 = vor.u32 %v768_v38, %v576_v39  ;;  %v640_v43 = vld [vmem:[%s1211_s3 + $0x88] sm:$0xf0]  ;;  %v807_v46 = vld [vmem:[%s1213_s5 + $0x38] sm:$0xff]  ;;  %v814_v47 = vld [vmem:[%s1213_s5 + $0x70] sm:$0xff]  ;;  %s527_s0 = sshll.u32 %s877_s17, 4  ;;  %s878_s20 = smov [#allocation4]   ;;  %s528_s0 = int_to_ptr.vmem [resolvable:$true] %s527_s0 }
  0x21   :  { %338 = vmatpush.bf16.msrb.mxu1 %v659_v20  ;;  %300 = vmatpush.bf16.msra.mxu2 %v583_v24  ;;  %v643_v44 = vor.u32 %v784_v42, %v640_v43  ;;  %v806_v48 = vld [vmem:[%s1213_s5 + $0x30] sm:$0xff]  ;;  %v813_v49 = vld [vmem:[%s1213_s5 + $0x68] sm:$0xff]  ;;  %v812_v51 = vld [vmem:[%s1213_s5 + $0x60] sm:$0xff]  ;;  %s538_s21 = sshll.u32 %s878_s20, 4  ;;  %s540_s24 = sshll.u32 %s1216_s8, 4  ;;  %s539_s21 = int_to_ptr.vmem [resolvable:$true] %s538_s21  ;;  %s541_s24 = int_to_ptr.hbm [resolvable:$true] %s540_s24 }
  0x22   :  { %313 = vmatpush.bf16.msra.mxu3 %v647_v28  ;;  %v805_v50 = vld [vmem:[%s1213_s5 + $0x28] sm:$0xff]  ;;  %v804_v52 = vld [vmem:[%s1213_s5 + $0x20] sm:$0xff]  ;;  %v811_v53 = vld [vmem:[%s1213_s5 + $0x58] sm:$0xff] }
  0x23   :  { %v36_v54 = vld [vmem:[%s1210_s2] sm:$0x3]  ;;  %v810_v55 = vld [vmem:[%s1213_s5 + $0x50] sm:$0xff]  ;;  %v803_v4 = vld [vmem:[%s1213_s5 + $0x18] sm:$0xff] }
  0x24   :  { %326 = vmatpush.bf16.msrb.mxu0 %v587_v29  ;;  %v38_v56 = vperm.slane %v36_v54, 0  ;;  %v39_v57 = vperm.slane %v36_v54, 1  ;;  %v809_v5 = vld [vmem:[%s1213_s5 + $0x48] sm:$0xff]  ;;  %v802_v6 = vld [vmem:[%s1213_s5 + $0x10] sm:$0xff]  ;;  %v808_v7 = vld [vmem:[%s1213_s5 + $0x40] sm:$0xff] }
  0x25   :  { %339 = vmatpush.bf16.msrb.mxu1 %v651_v32  ;;  %301 = vmatpush.bf16.msra.mxu2 %v575_v36  ;;  %v801_v8 = vld [vmem:[%s1213_s5 + $0x8] sm:$0xff]  ;;  %v800_v9 = vld [vmem:[%s1213_s5] sm:$0xff] }
  0x26   :  { %314 = vmatpush.bf16.msra.mxu3 %v639_v40  ;;  %v128_v10 = vld [vmem:[%s1212_s4] sm:$0x3] }
  0x27   :  { %v131_v11 = vperm.slane %v128_v10, 1  ;;  %v130_v16 = vperm.slane %v128_v10, 0  ;;  %v818_v30 = vld [vmem:[%s1214_s6] ss:$0 sm:$0xff]  ;;  %s529_s6 = sshll.u32 %s1215_s7, 4  ;;  %s530_s6 = int_to_ptr.hbm [resolvable:$true] %s529_s6 }
  0x28   :  { %327 = vmatpush.bf16.msrb.mxu0 %v579_v41 }
  0x29   :  { %340 = vmatpush.bf16.msrb.mxu1 %v643_v44  ;;  %482 = vmatpush.bf16.msrb.mxu2 %v807_v46 }
  0x2a   :  { %495 = vmatpush.bf16.msrb.mxu3 %v815_v45 }
  0x2d   :  { %483 = vmatpush.bf16.msrb.mxu2 %v806_v48 }
  0x2e   :  { %496 = vmatpush.bf16.msrb.mxu3 %v814_v47 }
  0x31   :  { %484 = vmatpush.bf16.msrb.mxu2 %v805_v50 }
  0x32   :  { %497 = vmatpush.bf16.msrb.mxu3 %v813_v49 }
  0x35   :  { %485 = vmatpush.bf16.msrb.mxu2 %v804_v52 }
  0x36   :  { %498 = vmatpush.bf16.msrb.mxu3 %v812_v51 }
  0x39   :  { %486 = vmatpush.bf16.msrb.mxu2 %v803_v4 }
  0x3a   :  { %499 = vmatpush.bf16.msrb.mxu3 %v811_v53 }
  0x3d   :  { %487 = vmatpush.bf16.msrb.mxu2 %v802_v6 }
  0x3e   :  { %500 = vmatpush.bf16.msrb.mxu3 %v810_v55 }
  0x41   :  { %488 = vmatpush.bf16.msrb.mxu2 %v801_v8 }
  0x42   :  { %501 = vmatpush.bf16.msrb.mxu3 %v809_v5 }
  0x45   :  { %489 = vmatpush.bf16.msrb.mxu2 %v800_v9 }
  0x46   :  { %502 = vmatpush.bf16.msrb.mxu3 %v808_v7 }
  0x88   :  { %v75_v58 = vpop.f32.mrf.mxu0 }
  0x89   :  { %v76_v59 = vadd.f32 %v75_v58, %v38_v56  ;;  %v88_v60 = vpop.f32.mrf.mxu1 }
  0x8a   :  { %v89_v61 = vadd.f32 %v88_v60, %v39_v57 }
  0x8b   :  { %v92_v62 = vmax.f32 %v76_v59, 0.0 }
  0x8c   :  { %v93_v63 = vmax.f32 %v89_v61, 0.0 }
  0x8d   :  { %v94_v0 = vpack.c.bf16 %v92_v62, %v92_v62 }
  0x8e   :  { %v95_v1 = vpack.c.bf16 %v93_v63, %v93_v63 }
  0x8f   :  { %302 = vmatmul.bf16.vlgmr.msra.gmra.mxu2 %v94_v0  ;;  %328 = vmatmul.bf16.vlgmr.msrb.gmra.mxu0 %v94_v0 }
  0x90   :  { %315 = vmatmul.bf16.vlgmr.msra.gmra.mxu3 %v95_v1  ;;  %341 = vmatmul.bf16.vlgmr.msrb.gmra.mxu1 %v95_v1  ;;  %v77_v2 = vpop.f32.mrf.mxu0 }
  0x91   :  { %v90_v3 = vpop.f32.mrf.mxu1 }
 0x10c   :  { %v329_v12 = vpop.f32.mrf.mxu0 }
 0x10d   :  { %v330_v13 = vadd.f32 %v329_v12, %v131_v11  ;;  %v342_v14 = vpop.f32.mrf.mxu1 }
 0x10f   :  { %v343_v15 = vadd.f32 %v342_v14, %v330_v13 }
 0x111   :  { %v347_v17 = vmax.f32 %v343_v15, 0.0 }
 0x112   :  { %v303_v18 = vpop.f32.mrf.mxu2 }
 0x113   :  { %v349_v19 = vpack.c.bf16 %v347_v17, %v347_v17  ;;  %v304_v20 = vadd.f32 %v303_v18, %v130_v16  ;;  %v316_v21 = vpop.f32.mrf.mxu3 }
 0x114   :  { %v331_v22 = vpop.f32.mrf.mxu0 }
 0x115   :  { %v317_v23 = vadd.f32 %v316_v21, %v304_v20  ;;  %v344_v24 = vpop.f32.mrf.mxu1  ;;  %503 = vmatmul.bf16.vlgmr.msrb.gmra.mxu3 %v349_v19 }
 0x117   :  { %v346_v25 = vmax.f32 %v317_v23, 0.0 }
 0x119   :  { %v348_v26 = vpack.c.bf16 %v346_v25, %v346_v25 }
 0x11a   :  { %v305_v27 = vpop.f32.mrf.mxu2 }
 0x11b   :  { %v318_v28 = vpop.f32.mrf.mxu3  ;;  %490 = vmatmul.bf16.vlgmr.msrb.gmra.mxu2 %v348_v26 }
 0x198   :  { %v504_v29 = vpop.f32.mrf.mxu3 }
 0x19e   :  { %v491_v31 = vpop.f32.mrf.mxu2 }
 0x19f   :  { %v492_v32 = vadd.f32 %v818_v30, %v491_v31 }
 0x1a0   :  { %v506_v33 = vpop.f32.mrf.mxu3 }
 0x1a1   :  { %v505_v34 = vadd.f32 %v504_v29, %v492_v32 }
 0x1a3   :  { %508 = vmax.xlane.f32.xlu0 %v505_v34 }
 0x1a6   :  { %v493_v35 = vpop.f32.mrf.mxu2 }
 0x216   :  { %v509_v36 = vpop.xlane.xlu0 %508 }
 0x217   :  { %v510_v37 = vsub.f32 %v505_v34, %v509_v36 }
 0x219   :  { %v511_v38 = vmul.f32 1.442695, %v510_v37 }
 0x21b   :  { %819 = vpow2.f32 %v511_v38 }
 0x221   :  { %v820_v39 = vpop.eup %819 }
 0x222   :  { %513 = vadd.xlane.f32.xlu0 %v820_v39 }
 0x295   :  { %v514_v40 = vpop.xlane.xlu0 %513 }
 0x296   :  { %821 = vrcp.f32 %v514_v40 }
 0x297   :  { %823 = vlog2.f32 %v514_v40 }
 0x29c   :  { %v822_v41 = vpop.eup %821 }
 0x29d   :  { %v824_v42 = vpop.eup %823  ;;  %v516_v43 = vmul.f32 %v822_v41, %v820_v39 }
 0x29e   :  { %v519_v44 = vmul.f32 0.6931472, %v824_v42 }
 0x29f   :  { %517 = vst [vmem:[#allocation2] sm:$0xff] %v516_v43 }
 0x2a0   :  { %532 = dma.vmem_to_hbm [thread:$0]  %s528_s0, 128, %s530_s6, [#allocation3]   ;;  %v520_v45 = vsub.f32 %v510_v37, %v519_v44 }
 0x2a2   :  { %521 = vst [vmem:[#allocation4] sm:$0xff] %v520_v45 }
 0x2a3   :  { %543 = dma.vmem_to_hbm [thread:$0]  %s539_s21, 128, %s541_s24, [#allocation5]  }
 0x2a4   :  { %873 = dma.done.wait [#allocation3], 128  }
 0x2a5   :  { %874 = vsyncadd [#allocation3], 4294967168 }
 0x2a6   :  { %875 = dma.done.wait [#allocation5], 128  }
 0x2a7   :  { %876 = vsyncadd [#allocation5], 4294967168 }
 0x2a8   :  { %552 = vsyncpa [#allocation3], 1 }
 0x2a9   :  { %553 = vsyncpa [#allocation5], 1 }

</bundles_post_ra>
